<compile_context>
chip_gen: v7x
topology: tpu7x:2x2x1
jax: 0.10.0
libtpu: 0.0.40
codegen_flags: <defaults>
</compile_context>

<pallas_src>
import functools

import jax
import jax.numpy as jnp
from jax.experimental import pallas as pl
from jax.experimental.pallas import tpu as pltpu

_NEG = -1e30  # large-negative fill for padded logit lanes (exp underflows to 0)


def _round_up(x, m):
    return (x + m - 1) // m * m


def _classifier_ce_kernel(reps_ref, w_ref, b_ref, labels_ref,
                          logits_ref, loss_ref, *, batch, block_b):
    # reps:   (TB, H)  f32
    # w:      (Lp, H)  f32   (PyTorch (L, H) layout, zero-padded rows up to Lp)
    # b:      (1, Lp)  f32   (padded entries = -1e30)
    # labels: (TB, 1)  i32
    # logits: (TB, Lp) f32   (lane-dense output, Lp multiple of 128)
    # loss:   (1, 1, 128) f32 per-tile partial sum of per-example CE
    i = pl.program_id(0)

    reps = reps_ref[...]
    # Dropout is identity in eval mode.
    # TODO(synk): train-time dropout would use pltpu.prng_seed / prng_random_bits.

    # logits = reps @ W^T + b  -- contract on H (W's last dim); MXU handles trans_b.
    logits = jax.lax.dot_general(
        reps, w_ref[...], (((1,), (1,)), ((), ())),
        preferred_element_type=jnp.float32) + b_ref[...]
    logits_ref[...] = logits  # single unmasked lane-dense store

    tb, lp = logits.shape

    # Numerically-stable log-sum-exp over the lane axis (padded lanes ~ exp(-1e30)=0).
    m = jnp.max(logits, axis=-1, keepdims=True)                      # (TB, 1)
    lse = jnp.log(jnp.sum(jnp.exp(logits - m), axis=-1, keepdims=True)) + m

    # Target logit selected in-kernel (replaces the HBM one-hot input).
    lane = jax.lax.broadcasted_iota(jnp.int32, (tb, lp), 1)
    tgt_mask = lane == labels_ref[...]                               # (TB, Lp)
    tgt = jnp.sum(jnp.where(tgt_mask, logits, 0.0), axis=-1, keepdims=True)

    per_ex = lse - tgt                                               # (TB, 1)

    # Mask out batch-padding rows so they affect neither the sum nor the mean.
    row = jax.lax.broadcasted_iota(jnp.int32, (tb, 1), 0) + i * block_b
    valid = (row < batch).astype(jnp.float32)
    tile_sum = jnp.sum(per_ex * valid)

    loss_ref[...] = jnp.broadcast_to(tile_sum, loss_ref.shape)       # lane-padded scalar


def classifier_with_ce(reps, cls_w, cls_b, labels, num_labels, *, block_b=256):
    """logits = reps @ cls_w.T + cls_b ; loss = mean CE(logits, labels)  (Pallas)."""
    B, H = reps.shape
    L = num_labels
    Lp = _round_up(max(L, 128), 128)          # lane-dense logits width
    TB = min(block_b, _round_up(B, 8))        # batch tile (sublane multiple of 8)
    B_pad = _round_up(B, TB)
    num_tiles = B_pad // TB

    # NOTE: for realistic GPT2 hidden sizes (H >= 768) feed reps/W as bfloat16
    # (keeping preferred_element_type=f32) for ~2-4x MXU throughput; f32 here keeps
    # the toy-size reference check exact.
    reps_f = reps.astype(jnp.float32)
    labels_i = labels.astype(jnp.int32)
    if B_pad != B:
        reps_f = jnp.pad(reps_f, ((0, B_pad - B), (0, 0)))
        labels_i = jnp.pad(labels_i, (0, B_pad - B))
    labels_col = labels_i.reshape(B_pad, 1)

    # Keep PyTorch (L, H) layout (no transpose); pad label rows to Lp with zeros
    # and bias with -1e30 so padded lanes never win the max / contribute to exp.
    w_pad = jnp.pad(cls_w.astype(jnp.float32), ((0, Lp - L), (0, 0)))
    b_pad = jnp.pad(cls_b.astype(jnp.float32).reshape(1, L),
                    ((0, 0), (0, Lp - L)), constant_values=_NEG)

    kernel = functools.partial(_classifier_ce_kernel, batch=B, block_b=TB)

    logits_pad, loss_parts = pl.pallas_call(
        kernel,
        out_shape=(
            jax.ShapeDtypeStruct((B_pad, Lp), jnp.float32),
            jax.ShapeDtypeStruct((num_tiles, 1, 128), jnp.float32),
        ),
        grid=(num_tiles,),
        in_specs=[
            pl.BlockSpec((TB, H), lambda i: (i, 0)),    # reps (double-buffered)
            pl.BlockSpec((Lp, H), lambda i: (0, 0)),    # classifier weight
            pl.BlockSpec((1, Lp), lambda i: (0, 0)),    # bias (lane-padded)
            pl.BlockSpec((TB, 1), lambda i: (i, 0)),    # labels column (int32)
        ],
        out_specs=(
            pl.BlockSpec((TB, Lp), lambda i: (i, 0)),       # lane-dense logits
            pl.BlockSpec((1, 1, 128), lambda i: (i, 0, 0)),  # per-tile loss partial
        ),
        compiler_params=pltpu.CompilerParams(
            dimension_semantics=("parallel",),   # tiles are independent -> both v7x TCs
        ),
    )(reps_f, w_pad, b_pad, labels_col)

    logits = logits_pad[:B, :L]
    loss = jnp.sum(loss_parts[:, 0, 0]) / B
    return logits, loss


def synthetic_encoder(input_ids, params):
    """Stub for the external AdaVAE encoder: returns (mean, None, None, representations)."""
    emb = params["emb"][input_ids]                      # (B, S, H)
    pooled = jnp.mean(emb, axis=1)                      # (B, H)
    mean = pooled @ params["enc_mean_w"] + params["enc_mean_b"]
    representations = pooled @ params["enc_rep_w"] + params["enc_rep_b"]
    return mean, None, None, representations


def adavae_latent_classification_forward(input_ids, labels, params,
                                          num_labels, use_mean=False):
    mean, _, _, representations = synthetic_encoder(input_ids, params)
    if use_mean:
        representations = mean
    # dropout: identity (eval mode)
    # TODO(synk): num_labels == 1 MSE branch of the module is not implemented here.
    lbl = labels if labels is not None else jnp.zeros((representations.shape[0],), jnp.int32)
    logits, loss = classifier_with_ce(
        representations, params["cls_w"], params["cls_b"], lbl, num_labels
    )
    if labels is not None:
        return loss, representations, logits
    return (logits,)


if __name__ == "__main__":
    # Small, module-consistent shapes: batch=8, seq=8, n_embd=32, label_size=4, vocab=50.
    B, S, H, L, V = 8, 8, 32, 4, 50

    key = jax.random.PRNGKey(0)
    k_emb, k_mw, k_mb, k_rw, k_rb, k_cw, k_cb, k_ids, k_lbl = jax.random.split(key, 9)

    params = {
        "emb":        0.02 * jax.random.normal(k_emb, (V, H), jnp.float32),
        "enc_mean_w": 0.02 * jax.random.normal(k_mw, (H, H), jnp.float32),
        "enc_mean_b": 0.02 * jax.random.normal(k_mb, (H,), jnp.float32),
        "enc_rep_w":  0.02 * jax.random.normal(k_rw, (H, H), jnp.float32),
        "enc_rep_b":  0.02 * jax.random.normal(k_rb, (H,), jnp.float32),
        "cls_w":      0.02 * jax.random.normal(k_cw, (L, H), jnp.float32),  # nn.Linear(H, L)
        "cls_b":      0.02 * jax.random.normal(k_cb, (L,), jnp.float32),
    }

    input_ids = jax.random.randint(k_ids, (B, S), 0, V, dtype=jnp.int32)
    labels = jax.random.randint(k_lbl, (B,), 0, L, dtype=jnp.int32)

    loss, representations, logits = adavae_latent_classification_forward(
        input_ids, labels, params, num_labels=L, use_mean=False
    )
    jax.block_until_ready((loss, representations, logits))

    # Pure-JAX reference check of the Pallas path (classifier + CE).
    ref_logits = representations @ params["cls_w"].T + params["cls_b"]
    ref_lse = jax.scipy.special.logsumexp(ref_logits, axis=-1)
    ref_loss = jnp.mean(ref_lse - ref_logits[jnp.arange(B), labels])
    assert logits.shape == (B, L), "logits shape mismatch"
    assert jnp.allclose(logits, ref_logits, atol=1e-5), "logits mismatch"
    assert jnp.allclose(loss, ref_loss, atol=1e-5), "loss mismatch"

    print("KERNEL_OK")
</pallas_src>

<mosaic_0001>
module attributes {stable_mosaic.version = 11 : i64} {
  func.func @_classifier_ce_kernel(%arg0: i32, %arg1: memref<8x32xf32, #tpu.memory_space<vmem>>, %arg2: memref<128x32xf32, #tpu.memory_space<vmem>>, %arg3: memref<1x128xf32, #tpu.memory_space<vmem>>, %arg4: memref<8x1xi32, #tpu.memory_space<vmem>>, %arg5: memref<8x128xf32, #tpu.memory_space<vmem>>, %arg6: memref<1x1x128xf32, #tpu.memory_space<vmem>>) attributes {dimension_semantics = [#tpu.dimension_semantics<parallel>], iteration_bounds = array<i64: 1>, scalar_prefetch = 0 : i64, scratch_operands = 0 : i64, tpu.core_type = #tpu.core_type<tc>, window_params = [{transform_indices = @transform_0, window_bounds = array<i64: 8, 32>}, {pipeline_mode = #tpu.pipeline_mode<synchronous>, transform_indices = @transform_1, window_bounds = array<i64: 128, 32>}, {pipeline_mode = #tpu.pipeline_mode<synchronous>, transform_indices = @transform_2, window_bounds = array<i64: 1, 128>}, {transform_indices = @transform_3, window_bounds = array<i64: 8, 1>}, {transform_indices = @transform_4, window_bounds = array<i64: 8, 128>}, {transform_indices = @transform_5, window_bounds = array<i64: 1, 1, 128>}]} {
    %c0 = arith.constant 0 : index
    %c0_0 = arith.constant 0 : index
    %0 = vector.load %arg1[%c0, %c0_0] : memref<8x32xf32, #tpu.memory_space<vmem>>, vector<8x32xf32>
    %c0_1 = arith.constant 0 : index
    %c0_2 = arith.constant 0 : index
    %1 = vector.load %arg2[%c0_1, %c0_2] : memref<128x32xf32, #tpu.memory_space<vmem>>, vector<128x32xf32>
    %cst = arith.constant dense<0.000000e+00> : vector<8x128xf32>
    %2 = tpu.matmul %0, %1, %cst {dimension_numbers = #tpu.dot_dimension_numbers<[1], [1], [0], [0], [0, 0, 1, 0], [], []>} : vector<8x32xf32>, vector<128x32xf32>, vector<8x128xf32> -> vector<8x128xf32>
    %c0_3 = arith.constant 0 : index
    %c0_4 = arith.constant 0 : index
    %3 = vector.load %arg3[%c0_3, %c0_4] : memref<1x128xf32, #tpu.memory_space<vmem>>, vector<1x128xf32>
    %4 = vector.broadcast %3 : vector<1x128xf32> to vector<8x128xf32>
    %5 = arith.addf %2, %4 : vector<8x128xf32>
    %c0_5 = arith.constant 0 : index
    %c0_6 = arith.constant 0 : index
    %6 = vector.load %arg5[%c0_5, %c0_6] : memref<8x128xf32, #tpu.memory_space<vmem>>, vector<8x128xf32>
    tpu.vector_store %arg5[%c0_5, %c0_6], %5 {strides = array<i32>} : memref<8x128xf32, #tpu.memory_space<vmem>>, vector<8x128xf32>,
    %cst_7 = arith.constant dense<0xFF800000> : vector<8xf32>
    %7 = vector.multi_reduction <maximumf>, %5, %cst_7 [1] : vector<8x128xf32> to vector<8xf32>
    %8 = vector.shape_cast %7 : vector<8xf32> to vector<8x1xf32>
    %9 = vector.broadcast %8 : vector<8x1xf32> to vector<8x128xf32>
    %10 = arith.subf %5, %9 : vector<8x128xf32>
    %11 = math.exp %10 : vector<8x128xf32>
    %cst_8 = arith.constant dense<0.000000e+00> : vector<8xf32>
    %12 = vector.multi_reduction <add>, %11, %cst_8 [1] : vector<8x128xf32> to vector<8xf32>
    %13 = vector.shape_cast %12 : vector<8xf32> to vector<8x1xf32>
    %14 = math.log %13 : vector<8x1xf32>
    %15 = arith.addf %14, %8 : vector<8x1xf32>
    %16 = tpu.iota {dimensions = array<i32: 1>} : vector<8x128xi32>
    %c0_9 = arith.constant 0 : index
    %c0_10 = arith.constant 0 : index
    %17 = vector.load %arg4[%c0_9, %c0_10] : memref<8x1xi32, #tpu.memory_space<vmem>>, vector<8x1xi32>
    %18 = vector.broadcast %17 : vector<8x1xi32> to vector<8x128xi32>
    %19 = arith.cmpi eq, %16, %18 : vector<8x128xi32>
    %cst_11 = arith.constant 0.000000e+00 : f32
    %20 = vector.broadcast %cst_11 : f32 to vector<8x128xf32>
    %21 = arith.select %19, %5, %20 : vector<8x128xi1>, vector<8x128xf32>
    %cst_12 = arith.constant dense<0.000000e+00> : vector<8xf32>
    %22 = vector.multi_reduction <add>, %21, %cst_12 [1] : vector<8x128xf32> to vector<8xf32>
    %23 = vector.shape_cast %22 : vector<8xf32> to vector<8x1xf32>
    %24 = arith.subf %15, %23 : vector<8x1xf32>
    %25 = tpu.iota {dimensions = array<i32: 0>} : vector<8x1xi32>
    %c8_i32 = arith.constant 8 : i32
    %26 = arith.muli %arg0, %c8_i32 : i32
    %27 = vector.broadcast %26 : i32 to vector<8x1xi32>
    %28 = arith.addi %25, %27 : vector<8x1xi32>
    %c8_i32_13 = arith.constant 8 : i32
    %29 = vector.broadcast %c8_i32_13 : i32 to vector<8x1xi32>
    %30 = arith.cmpi slt, %28, %29 : vector<8x1xi32>
    %31 = arith.extui %30 : vector<8x1xi1> to vector<8x1xi32>
    %32 = arith.sitofp %31 : vector<8x1xi32> to vector<8x1xf32>
    %33 = arith.mulf %24, %32 : vector<8x1xf32>
    %34 = vector.shape_cast %33 : vector<8x1xf32> to vector<1x8x1xf32>
    %cst_14 = arith.constant dense<0.000000e+00> : vector<1xf32>
    %35 = vector.multi_reduction <add>, %34, %cst_14 [1, 2] : vector<1x8x1xf32> to vector<1xf32>
    %36 = vector.shape_cast %35 : vector<1xf32> to vector<1x1x1xf32>
    %37 = vector.extract %36[0, 0, 0] : f32 from vector<1x1x1xf32>
    %38 = vector.broadcast %37 : f32 to vector<1x1x128xf32>
    %c0_15 = arith.constant 0 : index
    %c0_16 = arith.constant 0 : index
    %c0_17 = arith.constant 0 : index
    %39 = vector.load %arg6[%c0_15, %c0_16, %c0_17] : memref<1x1x128xf32, #tpu.memory_space<vmem>>, vector<1x1x128xf32>
    tpu.vector_store %arg6[%c0_15, %c0_16, %c0_17], %38 {strides = array<i32>} : memref<1x1x128xf32, #tpu.memory_space<vmem>>, vector<1x1x128xf32>,
    return
  }
  func.func @transform_0(%arg0: i32) -> (i32, i32) {
    %c0_i32 = arith.constant 0 : i32
    %c0_i32_0 = arith.constant 0 : i32
    return %arg0, %c0_i32 : i32, i32
  }
  func.func @transform_1(%arg0: i32) -> (i32, i32) {
    %c0_i32 = arith.constant 0 : i32
    %c0_i32_0 = arith.constant 0 : i32
    %c0_i32_1 = arith.constant 0 : i32
    return %c0_i32, %c0_i32_0 : i32, i32
  }
  func.func @transform_2(%arg0: i32) -> (i32, i32) {
    %c0_i32 = arith.constant 0 : i32
    %c0_i32_0 = arith.constant 0 : i32
    %c0_i32_1 = arith.constant 0 : i32
    return %c0_i32, %c0_i32_0 : i32, i32
  }
  func.func @transform_3(%arg0: i32) -> (i32, i32) {
    %c0_i32 = arith.constant 0 : i32
    %c0_i32_0 = arith.constant 0 : i32
    return %arg0, %c0_i32 : i32, i32
  }
  func.func @transform_4(%arg0: i32) -> (i32, i32) {
    %c0_i32 = arith.constant 0 : i32
    %c0_i32_0 = arith.constant 0 : i32
    return %arg0, %c0_i32 : i32, i32
  }
  func.func @transform_5(%arg0: i32) -> (i32, i32, i32) {
    %c0_i32 = arith.constant 0 : i32
    %c0_i32_0 = arith.constant 0 : i32
    %c0_i32_1 = arith.constant 0 : i32
    return %arg0, %c0_i32, %c0_i32_0 : i32, i32, i32
  }
}

</mosaic_0001>

<bundles_post_ra>
// kernel: tpu_custom_call.1
= control target key start
LH: loop header
LB: loop body
LE: loop exit
PB: predicated region body
PF: predicated region fallthrough
CT: control target
= control target key end

     0   :  { %11 = vsyncpa [#allocation3], 0  ;;  %vm45_vm0 = vcmask 261120   ;;  %v402_v2 = vmov 0.0|0.0   ;;  %vm403_vm2 = vmmov 0   ;;  %v404_v5 = vmov 0.0   ;;  %s542_s0 = inlined_call_operand.vmem [shape: f32[8,32], index: 0, kind: input, shape index: {}]   ;;  %s543_s1 = inlined_call_operand.vmem [shape: f32[128,32], index: 1, kind: input, shape index: {}]   ;;  %s544_s2 = inlined_call_operand.vmem [shape: f32[1,128], index: 2, kind: input, shape index: {}]   ;;  %s545_s3 = inlined_call_operand.vmem [shape: s32[8,1], index: 3, kind: input, shape index: {}]   ;;  %s546_s4 = inlined_call_operand.hbm [shape: f32[8,128], index: 4, kind: output, shape index: {0}]   ;;  %s547_s5 = inlined_call_operand.hbm [shape: f32[1,1,128], index: 5, kind: output, shape index: {1}]  }
   0x1   :  { %v22_v0 = vld [vmem:[%s543_s1] sm:$0xff]  ;;  %v23_v1 = vld [vmem:[%s543_s1 + $0x8] sm:$0xff]  ;;  %309 = vmatprep.subr.bf16.mxu0 %v402_v2  ;;  %vm446_vm1 = vmpackc.low %vm45_vm0, %vm45_vm0  ;;  %306 = vmatprep.mubr.msk.f32.mxu0 %vm403_vm2, %v404_v5 }
   0x2   :  { %v310_v3 = vpack.c.bf16 %v23_v1, %v22_v0  ;;  %v24_v6 = vld [vmem:[%s543_s1 + $0x10] sm:$0xff]  ;;  %v25_v7 = vld [vmem:[%s543_s1 + $0x18] sm:$0xff] }
   0x4   :  { %312 = vmatpush3.bf16.xpose.msk.msra.mxu0 %vm446_vm1, %v310_v3 }
   0x5   :  { %313 = vmatprep.subr.bf16.mxu0 %v402_v2 }
   0x6   :  { %12 = vsyncpa [#allocation5], 0  ;;  %v314_v8 = vpack.c.bf16 %v25_v7, %v24_v6  ;;  %v26_v9 = vld [vmem:[%s543_s1 + $0x20] sm:$0xff]  ;;  %v27_v10 = vld [vmem:[%s543_s1 + $0x28] sm:$0xff]  ;;  %v405_v28 = vmov 0   ;;  %v178_v37 = vlaneseq  ;;  %vm198_vm4 = vcmask 7168  }
   0x7   :  { %v318_v11 = vpack.c.bf16 %v27_v10, %v26_v9  ;;  %v28_v12 = vld [vmem:[%s543_s1 + $0x30] sm:$0xff]  ;;  %v29_v13 = vld [vmem:[%s543_s1 + $0x38] sm:$0xff]  ;;  %v30_v15 = vld [vmem:[%s543_s1 + $0x40] sm:$0xff]  ;;  %349 = vset.pattern.permute.xlu0 %v405_v28 }
   0x8   :  { %v322_v14 = vpack.c.bf16 %v29_v13, %v28_v12  ;;  %v31_v16 = vld [vmem:[%s543_s1 + $0x48] sm:$0xff]  ;;  %v32_v18 = vld [vmem:[%s543_s1 + $0x50] sm:$0xff]  ;;  %v33_v19 = vld [vmem:[%s543_s1 + $0x58] sm:$0xff]  ;;  %v179_v38 = vand.u32 127, %v178_v37 }
   0x9   :  { %v326_v17 = vpack.c.bf16 %v31_v16, %v30_v15  ;;  %v330_v20 = vpack.c.bf16 %v33_v19, %v32_v18  ;;  %v34_v21 = vld [vmem:[%s543_s1 + $0x60] sm:$0xff]  ;;  %v35_v22 = vld [vmem:[%s543_s1 + $0x68] sm:$0xff]  ;;  %v36_v24 = vld [vmem:[%s543_s1 + $0x70] sm:$0xff] }
   0xa   :  { %v334_v23 = vpack.c.bf16 %v35_v22, %v34_v21  ;;  %v37_v25 = vld [vmem:[%s543_s1 + $0x78] sm:$0xff]  ;;  %v21_v27 = vld [vmem:[%s542_s0] sm:$0xff]  ;;  %s406_s0 = smov [#allocation2]  }
   0xb   :  { %v338_v26 = vpack.c.bf16 %v37_v25, %v36_v24  ;;  %v239_v29 = vld [vmem:[%s544_s2] ss:$0 sm:$0xff]  ;;  %s217_s2 = sshll.u32 %s406_s0, 4  ;;  %s218_s2 = int_to_ptr.vmem [resolvable:$true] %s217_s2 }
   0xc   :  { %316 = vmatpush3.bf16.xpose.msk.msra.mxu0 %vm446_vm1, %v314_v8  ;;  %v180_v33 = vld [vmem:[%s545_s3] sm:$0xff]  ;;  %s354_s3 = scalar_lea.vmem %s218_s2, 128  ;;  %p359_p1 = scmp.lt.s32.totalorder %s218_s2, %s218_s2 }
   0xd   :  { %317 = vmatprep.subr.bf16.mxu0 %v402_v2  ;;  %p355_p0 = scmp.ne.s32.totalorder %s218_s2, %s354_s3  ;;  %p360_p2 = scmp.lt.s32.totalorder %s354_s3, %s354_s3 }
   0xf   :  { %p361_p3 = por %p360_p2, %p359_p1 }
  0x11   :  { %p362_p4 = pnand %p361_p3, %p355_p0 }
  0x14   :  { %320 = vmatpush3.bf16.xpose.msk.msra.mxu0 %vm446_vm1, %v318_v11 }
  0x15   :  { %321 = vmatprep.subr.bf16.mxu0 %v402_v2 }
  0x1c   :  { %324 = vmatpush3.bf16.xpose.msk.msra.mxu0 %vm446_vm1, %v322_v14 }
  0x1d   :  { %325 = vmatprep.subr.bf16.mxu0 %v402_v2 }
  0x24   :  { %328 = vmatpush3.bf16.xpose.msk.msra.mxu0 %vm446_vm1, %v326_v17 }
  0x25   :  { %329 = vmatprep.subr.bf16.mxu0 %v402_v2 }
  0x2c   :  { %332 = vmatpush3.bf16.xpose.msk.msra.mxu0 %vm446_vm1, %v330_v20 }
  0x2d   :  { %333 = vmatprep.subr.bf16.mxu0 %v402_v2 }
  0x34   :  { %336 = vmatpush3.bf16.xpose.msk.msra.mxu0 %vm446_vm1, %v334_v23 }
  0x35   :  { %337 = vmatprep.subr.bf16.mxu0 %v402_v2 }
  0x3c   :  { %340 = vmatpush3.bf16.xpose.msk.msra.mxu0 %vm446_vm1, %v338_v26 }
  0x43   :  { %307 = vmatmul.mubr.msk.f32.vlgmr.msra.gmra.mrb[0].mxu0 %vm45_vm0, %v21_v27 }
 0x116   :  { %v163_v30 = vpop.f32.mrb[0].mxu0 }
 0x117   :  { %v164_v31 = vadd.f32 %v239_v29, %v163_v30  ;;  %v308_v32 = vpop.f32.mrb[1].mxu0 }
 0x119   :  { %167 = vst [vmem:[#allocation2] sm:$0xff] %v164_v31  ;;  %168 = vmax.xlane.f32.xlu0 %v164_v31 }
 0x12f   :  { %182 = vperm.xlu0 %349, %v180_v33  }
 0x1a6   :  { %v169_v34 = vpop.xlane.xlu0 %168 }
 0x1a7   :  { %v170_v35 = vsub.f32 %v164_v31, %v169_v34 }
 0x1a9   :  { %v171_v36 = vmul.f32 1.442695, %v170_v35 }
 0x1ab   :  { %350 = vpow2.f32 %v171_v36 }
 0x1ae   :  { %v183_v39 = vpop.permute.xlu0 %182 }
 0x1af   :  { %vm184_vm3 = vcmp.eq.s32.totalorder %v179_v38, %v183_v39 }
 0x1b0   :  { %v185_v41 = vsel %vm184_vm3, %v164_v31, 0.0 }
 0x1b5   :  { %v351_v40 = vpop.eup %350 }
 0x1b6   :  { %173 = vadd.xlane.f32.xlu1 %v351_v40 }
 0x1ba   :  { %186 = vadd.xlane.f32.xlu1 %v185_v41 }
 0x243   :  { %v174_v42 = vpop.xlane.xlu1 %173 }
 0x244   :  { %352 = vlog2.f32 %v174_v42 }
 0x247   :  { %v187_v46 = vpop.xlane.xlu1 %186 }
 0x24e   :  { %v353_v43 = vpop.eup %352 }
 0x24f   :  { %v176_v44 = vmul.f32 0.6931472, %v353_v43 }
 0x251   :  { %v177_v45 = vadd.f32 %v176_v44, %v169_v34 }
 0x253   :  { %v188_v47 = vsub.f32 %v177_v45, %v187_v46 }
 0x255   :  { %v199_v48 = vsel %vm198_vm4, %v188_v47, 0.0 }
 0x256   :  { %200 = vadd.xlane.f32.xlu1 %v199_v48 }
 0x257   :  { %365 = shalt.err (!%p362_p4)
}
 0x258   :  { %s366_s7 = scalar_lea.hbm %s546_s4, 128 }
 0x259   :  { %p367_p5 = scmp.ne.s32.totalorder %s546_s4, %s366_s7  ;;  %p370_p6 = scmp.lt.u32.totalorder %s366_s7, %s546_s4 }
 0x25b   :  { %p372_p7 = pnand %p370_p6, %p367_p5 }
 0x25d   :  { %375 = shalt.err (!%p372_p7)
}
 0x25e   :  { %220 = dma.vmem_to_hbm [thread:$0]  %s218_s2, 128, %s546_s4, [#allocation3]  }
 0x25f   :  { %s407_s14 = smov [#allocation4]  }
 0x260   :  { %s227_s15 = sshll.u32 %s407_s14, 4  ;;  %s228_s15 = int_to_ptr.vmem [resolvable:$true] %s227_s15 }
 0x261   :  { %s376_s17 = scalar_lea.vmem %s228_s15, 16  ;;  %s380_s18 = scalar_lea.vmem %s228_s15, 32 }
 0x262   :  { %p377_p8 = scmp.ne.s32.totalorder %s228_s15, %s376_s17  ;;  %p381_p9 = scmp.lt.s32.totalorder %s228_s15, %s228_s15 }
 0x263   :  { %p382_p10 = scmp.lt.s32.totalorder %s380_s18, %s376_s17 }
 0x265   :  { %p383_p11 = por %p382_p10, %p381_p9 }
 0x267   :  { %p384_p12 = pnand %p383_p11, %p377_p8 }
 0x2e3   :  { %v201_v49 = vpop.xlane.xlu1 %200 }
 0x2e4   :  { %v202_v50 = vrot.slane %v201_v49, 4 }
 0x2e6   :  { %v203_v51 = vadd.f32 %v202_v50, %v201_v49 }
 0x2e8   :  { %v204_v52 = vrot.slane %v203_v51, 2 }
 0x2ea   :  { %v205_v53 = vadd.f32 %v204_v52, %v203_v51 }
 0x2ec   :  { %v206_v54 = vrot.slane %v205_v53, 1 }
 0x2ee   :  { %v207_v55 = vadd.f32 %v206_v54, %v205_v53 }
 0x2f0   :  { %341 = vpush %v207_v55 }
 0x321   :  { %s342_s16 = spop %341 }
 0x322   :  { %v209_v56 = vstv %s342_s16 }
 0x323   :  { %210 = vst [vmem:[#allocation4] sm:$0x1] %v209_v56 }
 0x324   :  { %387 = shalt.err (!%p384_p12)
}
 0x325   :  { %s388_s20 = scalar_lea.hbm %s547_s5, 16 }
 0x326   :  { %p389_p13 = scmp.ne.s32.totalorder %s547_s5, %s388_s20  ;;  %p392_p0 = scmp.lt.u32.totalorder %s388_s20, %s547_s5 }
 0x328   :  { %p394_p1 = pnand %p392_p0, %p389_p13 }
 0x32a   :  { %397 = shalt.err (!%p394_p1)
}
 0x32b   :  { %230 = dma.vmem_to_hbm [thread:$0]  %s228_s15, 16, %s547_s5, [#allocation5]  }
 0x32c   :  { %398 = dma.done.wait [#allocation3], 128  }
 0x32d   :  { %399 = vsyncadd [#allocation3], 4294967168 }
 0x32e   :  { %400 = dma.done.wait [#allocation5], 16  }
 0x32f   :  { %401 = vsyncadd [#allocation5], 4294967280 }
 0x330   :  { %237 = vsyncpa [#allocation3], 1 }
 0x331   :  { %238 = vsyncpa [#allocation5], 1 }

</bundles_post_ra>
